<compile_context>
chip_gen: v5e
topology: v5e:2x2
jax: 0.10.0
libtpu: 0.0.40
codegen_flags: <defaults>
</compile_context>

<pallas_src>
import jax
import jax.numpy as jnp
from jax.experimental import pallas as pl
from jax.experimental.pallas import tpu as pltpu


def _fill_kernel(lbs_ref, out_ref):
    # lbs_ref: (1,) float32 in SMEM (single domain label).
    # out_ref: (N, H) int32 in VMEM (full logical output).
    # Convert once on the scalar, then splat: vst is the only vector resource.
    val = lbs_ref[0].astype(jnp.int32)
    out_ref[...] = jnp.full(out_ref.shape, val, dtype=jnp.int32)


def _row_fill_kernel(lbs_ref, out_ref):
    # lbs_ref: (1, H) float32 in VMEM (per-column labels, rare case L == H).
    # out_ref: (N, H) int32 in VMEM.
    row = lbs_ref[...].astype(jnp.int32)                 # one row of converts
    out_ref[...] = jnp.broadcast_to(row, out_ref.shape)  # sublane broadcast


def image_label_resize(x, need_backprop):
    """JAX/Pallas equivalent of ImageLabelResizeLayer.forward (int32 output)."""
    n = x.shape[0]
    h = x.shape[2]
    lbs = jnp.asarray(need_backprop, dtype=jnp.float32).reshape(-1)
    l = lbs.shape[0]

    if l not in (1, h):
        # The NumPy reference (`gt_blob[i, :] = lbs`) would also fail here.
        raise ValueError(
            f"need_backprop length {l} is not broadcastable to row length {h}"
        )

    out_shape = jax.ShapeDtypeStruct((n, h), jnp.int32)
    # Full-array output block at the logical shape: no padding, no wrapper
    # slice.  Mosaic handles the sub-(8,128) tile with a masked store; at
    # these sizes the extra XLA slice kernel would cost far more.
    out_spec = pl.BlockSpec((n, h), lambda: (0, 0), memory_space=pltpu.VMEM)

    if l == 1:
        # Typical case: one domain label; keep it in SMEM (no VMEM input DMA).
        out = pl.pallas_call(
            _fill_kernel,
            out_shape=out_shape,
            in_specs=[pl.BlockSpec(memory_space=pltpu.SMEM)],
            out_specs=out_spec,
            cost_estimate=pl.CostEstimate(
                flops=0, transcendentals=0, bytes_accessed=4 + 4 * n * h
            ),
        )(lbs)
    else:
        # Rare case: one label per column; pass the row at its logical shape
        # (reshape is metadata-only) and broadcast across rows in-kernel.
        out = pl.pallas_call(
            _row_fill_kernel,
            out_shape=out_shape,
            in_specs=[
                pl.BlockSpec((1, h), lambda: (0, 0), memory_space=pltpu.VMEM)
            ],
            out_specs=out_spec,
            cost_estimate=pl.CostEstimate(
                flops=0, transcendentals=0, bytes_accessed=4 * h + 4 * n * h
            ),
        )(lbs.reshape(1, h))

    return out


if __name__ == "__main__":
    key = jax.random.PRNGKey(0)
    kx, _ = jax.random.split(key)

    # x is an NCHW feature map; only N and H drive the output shape.
    x = jax.random.normal(kx, (2, 4, 16, 16), dtype=jnp.float32)
    n, h = x.shape[0], x.shape[2]

    # Case 1 (typical): single domain label -> SMEM scalar splat path.
    need_backprop = jnp.array([1.0], dtype=jnp.float32)
    y = image_label_resize(x, need_backprop)
    jax.block_until_ready(y)

    expected = jnp.full((n, h), 1, dtype=jnp.int32)
    assert y.shape == (n, h), y.shape
    assert y.dtype == jnp.int32, y.dtype
    assert bool(jnp.all(y == expected)), (y, expected)

    # Case 2 (rare): per-column labels of length H -> row broadcast path.
    row_labels = jnp.arange(h, dtype=jnp.float32)
    y2 = image_label_resize(x, row_labels)
    jax.block_until_ready(y2)

    expected2 = jnp.broadcast_to(jnp.arange(h, dtype=jnp.int32), (n, h))
    assert y2.shape == (n, h), y2.shape
    assert y2.dtype == jnp.int32, y2.dtype
    assert bool(jnp.all(y2 == expected2)), (y2, expected2)

    print("KERNEL_OK")
</pallas_src>

<mosaic_0001>
module attributes {stable_mosaic.version = 11 : i64} {
  func.func @_fill_kernel(%arg0: memref<1xf32, #tpu.memory_space<smem>>, %arg1: memref<2x16xi32, #tpu.memory_space<vmem>>) attributes {dimension_semantics = [], scalar_prefetch = 0 : i64, scratch_operands = 0 : i64, tpu.core_type = #tpu.core_type<tc>} {
    %c0 = arith.constant 0 : index
    %0 = memref.load %arg0[%c0] : memref<1xf32, #tpu.memory_space<smem>>
    %1 = arith.fptosi %0 : f32 to i32
    %2 = vector.broadcast %1 : i32 to vector<2x16xi32>
    %c0_0 = arith.constant 0 : index
    %c0_1 = arith.constant 0 : index
    %3 = vector.load %arg1[%c0_0, %c0_1] : memref<2x16xi32, #tpu.memory_space<vmem>>, vector<2x16xi32>
    tpu.vector_store %arg1[%c0_0, %c0_1], %2 {strides = array<i32>} : memref<2x16xi32, #tpu.memory_space<vmem>>, vector<2x16xi32>,
    return
  }
}

</mosaic_0001>

<bundles_post_ra>
// kernel: tpu_custom_call.1
= control target key start
LH: loop header
LB: loop body
LE: loop exit
PB: predicated region body
PF: predicated region fallthrough
CT: control target
= control target key end

     0   :  { %s86_s0 = inlined_call_operand.<no memory space> [shape: f32[1], index: 0, kind: input, shape index: {}]   ;;  %s87_s1 = inlined_call_operand.hbm [shape: s32[2,16], index: 1, kind: output, shape index: {}]  }
   0x1   :  { %p31_p0 = scmp.lt.s32.totalorder %s86_s0, 0  ;;  %s32_s10 = sceil.f32 %s86_s0 }
   0x2   :  { %7 = vsyncpa [#allocation4], 0  ;;  %s33_s13 = sfloor.f32 %s86_s0  ;;  %s63_s14 = smov [#allocation3]   ;;  %vm13_vm0 = vcmask 123904  }
   0x3   :  { %s89_s10 = smov (!%p31_p0, %s32_s10), %s33_s13  ;;  %s20_s15 = sshll.u32 %s63_s14, 4  ;;  %s21_s15 = int_to_ptr.vmem [resolvable:$true] %s20_s15 }
   0x4   :  { %s22_s18 = sshll.u32 %s87_s1, 4  ;;  %s35_s19 = scvt.f32.s32 %s89_s10  ;;  %s23_s18 = int_to_ptr.hbm [resolvable:$true] %s22_s18 }
   0x6   :  { %v12_v0 = vstv %s35_s19 }
   0x7   :  { %14 = vst.msk [vmem:[#allocation3] sm:$0x3] %vm13_vm0, %v12_v0 }
   0x8   :  { %25 = dma.vmem_to_hbm [thread:$0]  %s21_s15, 32, %s23_s18, [#allocation4]  }
   0x9   :  { %61 = dma.done.wait [#allocation4], 32  }
   0xa   :  { %62 = vsyncadd [#allocation4], 4294967264 }
   0xb   :  { %30 = vsyncpa [#allocation4], 1 }

</bundles_post_ra>
